<compile_context>
chip_gen: v7x
topology: tpu7x:2x2x1
jax: 0.10.0
libtpu: 0.0.40
codegen_flags: <defaults>
</compile_context>

<pallas_src>
import functools

import numpy as np
import jax
import jax.numpy as jnp
from jax import lax
from jax.experimental import pallas as pl
from jax.experimental.pallas import tpu as pltpu

EPS = 1e-5


def _default_vmem_limit():
    try:
        kind = jax.devices()[0].device_kind.lower()
    except Exception:
        return 48 * 1024 * 1024
    if "v5" in kind or "v6" in kind:      # 128 MiB physical VMEM
        return 96 * 1024 * 1024
    return 48 * 1024 * 1024               # v7x generation: 64 MiB physical VMEM


VMEM_LIMIT = _default_vmem_limit()
VMEM_BUDGET = VMEM_LIMIT - 8 * 1024 * 1024   # headroom for Mosaic internal scratch


def _round_up(v, m):
    return (v + m - 1) // m * m


# --------------------------------------------------------------------------- kernels
def _conv_stats_kernel(x_ref, w_ref, sum_ref, ssq_ref, *, compute_dtype):
    """z = W @ x (1x1 conv, NO bias) for one (batch, lane-tile) block + partial stats.

    Padded lanes / padded input channels contribute exactly 0 to z, so no masking or
    glue-side correction is required.  Excluding the bias also keeps E[z^2]-E[z]^2
    well-conditioned (bias cancels inside BatchNorm anyway).
    """
    z = jnp.dot(w_ref[...], x_ref[...].astype(compute_dtype),
                preferred_element_type=jnp.float32)
    sum_ref[...] = jnp.sum(z, axis=1, keepdims=True)        # (C_out_p, 1)
    ssq_ref[...] = jnp.sum(z * z, axis=1, keepdims=True)    # (C_out_p, 1)


def _conv_stats_store_kernel(x_ref, w_ref, y_ref, sum_ref, ssq_ref, *, compute_dtype):
    """Same as above but also stores z to HBM (store/reload path for C_out < C_in)."""
    z = jnp.dot(w_ref[...], x_ref[...].astype(compute_dtype),
                preferred_element_type=jnp.float32)
    y_ref[...] = z.astype(y_ref.dtype)
    sum_ref[...] = jnp.sum(z, axis=1, keepdims=True)
    ssq_ref[...] = jnp.sum(z * z, axis=1, keepdims=True)


def _matmul_shift_relu_kernel(x_ref, w_ref, shift_ref, o_ref, *, compute_dtype):
    """(scale*W) @ x + shift, ReLU.  BN scale folded into the weight."""
    z = jnp.dot(w_ref[...], x_ref[...].astype(compute_dtype),
                preferred_element_type=jnp.float32)
    o_ref[...] = jnp.maximum(z + shift_ref[...], 0.0).astype(o_ref.dtype)


def _scale_shift_relu_kernel(y_ref, scale_ref, shift_ref, o_ref):
    """Pure-VPU epilogue for the store/reload path: scale*z + shift, ReLU."""
    z = y_ref[...].astype(jnp.float32)
    o_ref[...] = jnp.maximum(z * scale_ref[...] + shift_ref[...], 0.0).astype(o_ref.dtype)


# --------------------------------------------------------------------------- helpers
def _pick_tiles(hw, per_lane_bytes, weight_bytes, target):
    """Lane (H*W) tiling: multiples of 128, as large as the VMEM budget allows,
    rebalanced so zero-padding of the lane axis stays minimal."""
    hw128 = _round_up(hw, 128)
    budget = max(VMEM_BUDGET - weight_bytes, 2 * 128 * per_lane_bytes)
    max_tile = max(128, (budget // per_lane_bytes) // 128 * 128)
    tile = min(_round_up(max(int(target), 128), 128), max_tile, hw128)
    num_tiles = -(-hw128 // tile)
    tile = _round_up(-(-hw128 // num_tiles), 128)
    return tile, num_tiles, num_tiles * tile


# --------------------------------------------------------------------------- wrapper
@functools.partial(jax.jit, static_argnames=("is_batchnorm", "compute_dtype",
                                              "tile_target", "single_buffer_consts"))
def unet_grid_gating_signal(x, w, b, gamma, beta, *, is_batchnorm=True,
                            compute_dtype=jnp.bfloat16, tile_target=2048,
                            single_buffer_consts=False):
    """Forward pass of UnetGridGatingSignal3: ReLU(BN(Conv1x1(x))).

    x:     (B, C_in, H, W)
    w:     (C_out, C_in)   1x1 conv weight
    b:     (C_out,)        conv bias
    gamma: (C_out,)        BN weight
    beta:  (C_out,)        BN bias
    BatchNorm is evaluated in training mode (batch statistics, biased variance,
    eps=1e-5), matching the default nn.BatchNorm2d forward of the module.
    """
    B, C_in, H, W = x.shape
    C_out = w.shape[0]
    HW = H * W
    N = B * HW
    out_dtype = x.dtype

    c_in_p = _round_up(C_in, 8)
    c_out_p = _round_up(C_out, 8)

    x_bytes = jnp.dtype(x.dtype).itemsize
    cd_bytes = jnp.dtype(compute_dtype).itemsize
    out_bytes = jnp.dtype(out_dtype).itemsize

    # store/reload only when the gating signal reduces channels (fewer HBM bytes than
    # recomputing the 1x1 conv in pass 2)
    store_reload = is_batchnorm and (C_out < C_in)

    per_lane = 2 * (c_in_p * max(x_bytes, cd_bytes) + c_out_p * max(out_bytes, cd_bytes))
    weight_vmem = (1 if single_buffer_consts else 2) * c_out_p * c_in_p * cd_bytes
    tile_hw, num_tiles, hw_pad = _pick_tiles(HW, per_lane, weight_vmem, tile_target)

    # (B, C, H, W) -> (B, C, H*W) is a free reshape; no transposes anywhere.
    x3 = x.reshape(B, C_in, HW)
    needs_pad = (c_in_p != C_in) or (hw_pad != HW)
    if needs_pad:
        # pad + cast fuse into a single copy under jit; padded lanes/channels give z == 0.
        x3 = jnp.pad(x3, ((0, 0), (0, c_in_p - C_in), (0, hw_pad - HW))).astype(compute_dtype)
    # else: leave x in HBM in its original dtype and cast per-block inside the kernel
    # (cheaper than an extra wrapper-side cast pass for this mem-bound op).

    w_p = w.astype(jnp.float32)
    if c_out_p != C_out or c_in_p != C_in:
        w_p = jnp.pad(w_p, ((0, c_out_p - C_out), (0, c_in_p - C_in)))
    b_p = b.astype(jnp.float32)
    if c_out_p != C_out:
        b_p = jnp.pad(b_p, (0, c_out_p - C_out))

    cparams = pltpu.CompilerParams(
        dimension_semantics=("parallel", "parallel"),   # megacore sharding on v7x
        vmem_limit_bytes=VMEM_LIMIT)

    def const_spec(shape):
        """Grid-invariant operand (weight / shift): index_map never changes."""
        idx = lambda bb, t, _n=len(shape): (0,) * _n
        if single_buffer_consts:
            # single-buffering reclaims VMEM for larger lane tiles (matters on v7x)
            return pl.BlockSpec(shape, idx, pipeline_mode=pl.Buffered(1))
        return pl.BlockSpec(shape, idx)

    x_spec = pl.BlockSpec((pl.Squeezed(), c_in_p, tile_hw), lambda bb, t: (bb, 0, t))
    out_spec = pl.BlockSpec((pl.Squeezed(), c_out_p, tile_hw), lambda bb, t: (bb, 0, t))
    stat_spec = pl.BlockSpec((pl.Squeezed(), pl.Squeezed(), c_out_p, 1),
                             lambda bb, t: (bb, t, 0, 0))
    stat_shape = jax.ShapeDtypeStruct((B, num_tiles, c_out_p, 1), jnp.float32)

    y_buf = None
    if is_batchnorm:
        g_p = gamma.astype(jnp.float32)
        be_p = beta.astype(jnp.float32)
        if c_out_p != C_out:
            g_p = jnp.pad(g_p, (0, c_out_p - C_out))
            be_p = jnp.pad(be_p, (0, c_out_p - C_out))

        # ---- pass 1: 1x1 conv (no bias) + per-(batch, tile) partial statistics ----
        if store_reload:
            y_buf, sums, ssqs = pl.pallas_call(
                functools.partial(_conv_stats_store_kernel, compute_dtype=compute_dtype),
                out_shape=(jax.ShapeDtypeStruct((B, c_out_p, hw_pad), compute_dtype),
                           stat_shape, stat_shape),
                grid_spec=pltpu.PrefetchScalarGridSpec(
                    num_scalar_prefetch=0, grid=(B, num_tiles),
                    in_specs=[x_spec, const_spec((c_out_p, c_in_p))],
                    out_specs=(out_spec, stat_spec, stat_spec)),
                compiler_params=cparams,
            )(x3, w_p.astype(compute_dtype))
        else:
            sums, ssqs = pl.pallas_call(
                functools.partial(_conv_stats_kernel, compute_dtype=compute_dtype),
                out_shape=(stat_shape, stat_shape),
                grid_spec=pltpu.PrefetchScalarGridSpec(
                    num_scalar_prefetch=0, grid=(B, num_tiles),
                    in_specs=[x_spec, const_spec((c_out_p, c_in_p))],
                    out_specs=(stat_spec, stat_spec)),
                compiler_params=cparams,
            )(x3, w_p.astype(compute_dtype))

        # ---- tiny JAX glue: global batch stats, fold BN into scale / shift ----
        mean_z = jnp.sum(sums[..., 0], axis=(0, 1)) / N
        var = jnp.maximum(jnp.sum(ssqs[..., 0], axis=(0, 1)) / N - mean_z * mean_z, 0.0)
        scale = g_p * lax.rsqrt(var + EPS)                   # gamma / sqrt(var + eps)
        shift = (be_p - scale * mean_z).reshape(c_out_p, 1)  # conv bias cancels inside BN
    else:
        scale = None
        shift = b_p.reshape(c_out_p, 1)

    # ---- pass 2: normalization + ReLU ----
    out_shape = jax.ShapeDtypeStruct((B, c_out_p, hw_pad), out_dtype)
    if store_reload:
        out3 = pl.pallas_call(
            _scale_shift_relu_kernel,
            out_shape=out_shape,
            grid_spec=pltpu.PrefetchScalarGridSpec(
                num_scalar_prefetch=0, grid=(B, num_tiles),
                in_specs=[pl.BlockSpec((pl.Squeezed(), c_out_p, tile_hw),
                                       lambda bb, t: (bb, 0, t)),
                          const_spec((c_out_p, 1)),
                          const_spec((c_out_p, 1))],
                out_specs=out_spec),
            compiler_params=cparams,
        )(y_buf, scale.reshape(c_out_p, 1), shift)
    else:
        if is_batchnorm:
            w_fused = (scale[:, None] * w_p).astype(compute_dtype)   # fold BN scale into W
        else:
            w_fused = w_p.astype(compute_dtype)
        out3 = pl.pallas_call(
            functools.partial(_matmul_shift_relu_kernel, compute_dtype=compute_dtype),
            out_shape=out_shape,
            grid_spec=pltpu.PrefetchScalarGridSpec(
                num_scalar_prefetch=0, grid=(B, num_tiles),
                in_specs=[x_spec, const_spec((c_out_p, c_in_p)), const_spec((c_out_p, 1))],
                out_specs=out_spec),
            compiler_params=cparams,
        )(x3, w_fused, shift)

    if c_out_p != C_out or hw_pad != HW:
        out3 = out3[:, :C_out, :HW]
    return out3.reshape(B, C_out, H, W)      # free reshape, no transpose


# --------------------------------------------------------------------------- reference
def _reference(x, w, b, gamma, beta, is_batchnorm=True):
    """Plain-JAX mirror of the PyTorch module forward (training-mode BN, biased var)."""
    y = jnp.einsum('oi,bihw->bohw', w, x) + b[None, :, None, None]
    if is_batchnorm:
        m = y.mean(axis=(0, 2, 3), keepdims=True)
        v = ((y - m) ** 2).mean(axis=(0, 2, 3), keepdims=True)
        y = gamma[None, :, None, None] * (y - m) / jnp.sqrt(v + EPS) + beta[None, :, None, None]
    return jnp.maximum(y, 0.0)


def init_params(key, in_size, out_size):
    k1, k2, k3 = jax.random.split(key, 3)
    # kaiming_normal fan_in (a=0) for the 1x1 conv weight
    w = jax.random.normal(k1, (out_size, in_size), jnp.float32) * np.sqrt(2.0 / in_size)
    b = 0.1 * jax.random.normal(k2, (out_size,), jnp.float32)
    gamma = 1.0 + 0.02 * jax.random.normal(k3, (out_size,), jnp.float32)   # BN: N(1, 0.02)
    beta = jnp.zeros((out_size,), jnp.float32)                             # BN: 0
    return w, b, gamma, beta


# --------------------------------------------------------------------------- demo / test
if __name__ == "__main__":
    key = jax.random.PRNGKey(0)
    ks = jax.random.split(key, 8)

    def check(kx, kp, B, C_in, C_out, H, W, *, compute_dtype, tile_target=2048,
              is_batchnorm=True, tol=1e-4):
        x = jax.random.normal(kx, (B, C_in, H, W), jnp.float32)
        w, b, gamma, beta = init_params(kp, C_in, C_out)
        out = unet_grid_gating_signal(x, w, b, gamma, beta, is_batchnorm=is_batchnorm,
                                      compute_dtype=compute_dtype, tile_target=tile_target)
        jax.block_until_ready(out)
        ref = _reference(x, w, b, gamma, beta, is_batchnorm=is_batchnorm)
        np.testing.assert_allclose(np.asarray(out), np.asarray(ref), rtol=tol, atol=tol)
        assert out.shape == (B, C_out, H, W)

    # 1) f32, aligned shapes, multi-tile lane grid + batch grid axis (recompute path)
    check(ks[0], ks[1], 2, 4, 8, 16, 16, compute_dtype=jnp.float32, tile_target=128)
    # 2) f32, ragged shapes (channel + lane padding), channel-reducing -> store/reload path
    check(ks[2], ks[3], 2, 12, 6, 13, 11, compute_dtype=jnp.float32)
    # 3) f32, no batchnorm (single fused conv + bias + ReLU pass)
    check(ks[4], ks[5], 2, 4, 8, 16, 16, compute_dtype=jnp.float32, is_batchnorm=False)
    # 4) default bf16 MXU operands (stats/normalization stay f32) -- looser tolerance by design
    check(ks[6], ks[7], 2, 8, 16, 16, 16, compute_dtype=jnp.bfloat16, tol=5e-2)

    print("KERNEL_OK")
</pallas_src>

<mosaic_0001>
module attributes {stable_mosaic.version = 11 : i64} {
  func.func @_conv_stats_kernel(%arg0: i32, %arg1: i32, %arg2: memref<1x8x128xf32, #tpu.memory_space<vmem>>, %arg3: memref<8x8xf32, #tpu.memory_space<vmem>>, %arg4: memref<1x1x8x1xf32, #tpu.memory_space<vmem>>, %arg5: memref<1x1x8x1xf32, #tpu.memory_space<vmem>>) attributes {dimension_semantics = [#tpu.dimension_semantics<parallel>, #tpu.dimension_semantics<parallel>], iteration_bounds = array<i64: 2, 2>, scalar_prefetch = 0 : i64, scratch_operands = 0 : i64, tpu.core_type = #tpu.core_type<tc>, window_params = [{transform_indices = @transform_0, window_bounds = array<i64: 1, 8, 128>}, {pipeline_mode = #tpu.pipeline_mode<synchronous>, transform_indices = @transform_1, window_bounds = array<i64: 8, 8>}, {transform_indices = @transform_2, window_bounds = array<i64: 1, 1, 8, 1>}, {transform_indices = @transform_3, window_bounds = array<i64: 1, 1, 8, 1>}]} {
    %c0 = arith.constant 0 : index
    %c0_0 = arith.constant 0 : index
    %0 = vector.load %arg3[%c0, %c0_0] : memref<8x8xf32, #tpu.memory_space<vmem>>, vector<8x8xf32>
    %c0_1 = arith.constant 0 : index
    %c0_2 = arith.constant 0 : index
    %c0_3 = arith.constant 0 : index
    %1 = vector.load %arg2[%c0_1, %c0_2, %c0_3] : memref<1x8x128xf32, #tpu.memory_space<vmem>>, vector<1x8x128xf32>
    %2 = vector.shape_cast %1 : vector<1x8x128xf32> to vector<8x128xf32>
    %cst = arith.constant dense<0.000000e+00> : vector<8x128xf32>
    %3 = tpu.matmul %0, %2, %cst {dimension_numbers = #tpu.dot_dimension_numbers<[1], [0], [0], [1], [0, 0, 1, 1], [], []>} : vector<8x8xf32>, vector<8x128xf32>, vector<8x128xf32> -> vector<8x128xf32>
    %cst_4 = arith.constant dense<0.000000e+00> : vector<8xf32>
    %4 = vector.multi_reduction <add>, %3, %cst_4 [1] : vector<8x128xf32> to vector<8xf32>
    %5 = vector.shape_cast %4 : vector<8xf32> to vector<8x1xf32>
    %c0_5 = arith.constant 0 : index
    %c0_6 = arith.constant 0 : index
    %c0_7 = arith.constant 0 : index
    %c0_8 = arith.constant 0 : index
    %6 = vector.load %arg4[%c0_5, %c0_6, %c0_7, %c0_8] : memref<1x1x8x1xf32, #tpu.memory_space<vmem>>, vector<1x1x8x1xf32>
    %7 = vector.shape_cast %6 : vector<1x1x8x1xf32> to vector<8x1xf32>
    %8 = vector.shape_cast %5 : vector<8x1xf32> to vector<1x1x8x1xf32>
    tpu.vector_store %arg4[%c0_5, %c0_6, %c0_7, %c0_8], %8 {strides = array<i32>} : memref<1x1x8x1xf32, #tpu.memory_space<vmem>>, vector<1x1x8x1xf32>,
    %9 = arith.mulf %3, %3 : vector<8x128xf32>
    %cst_9 = arith.constant dense<0.000000e+00> : vector<8xf32>
    %10 = vector.multi_reduction <add>, %9, %cst_9 [1] : vector<8x128xf32> to vector<8xf32>
    %11 = vector.shape_cast %10 : vector<8xf32> to vector<8x1xf32>
    %c0_10 = arith.constant 0 : index
    %c0_11 = arith.constant 0 : index
    %c0_12 = arith.constant 0 : index
    %c0_13 = arith.constant 0 : index
    %12 = vector.load %arg5[%c0_10, %c0_11, %c0_12, %c0_13] : memref<1x1x8x1xf32, #tpu.memory_space<vmem>>, vector<1x1x8x1xf32>
    %13 = vector.shape_cast %12 : vector<1x1x8x1xf32> to vector<8x1xf32>
    %14 = vector.shape_cast %11 : vector<8x1xf32> to vector<1x1x8x1xf32>
    tpu.vector_store %arg5[%c0_10, %c0_11, %c0_12, %c0_13], %14 {strides = array<i32>} : memref<1x1x8x1xf32, #tpu.memory_space<vmem>>, vector<1x1x8x1xf32>,
    return
  }
  func.func @transform_0(%arg0: i32, %arg1: i32) -> (i32, i32, i32) {
    %c0_i32 = arith.constant 0 : i32
    %c0_i32_0 = arith.constant 0 : i32
    return %arg0, %c0_i32, %arg1 : i32, i32, i32
  }
  func.func @transform_1(%arg0: i32, %arg1: i32) -> (i32, i32) {
    %c0_i32 = arith.constant 0 : i32
    %c0_i32_0 = arith.constant 0 : i32
    %c0_i32_1 = arith.constant 0 : i32
    return %c0_i32, %c0_i32_0 : i32, i32
  }
  func.func @transform_2(%arg0: i32, %arg1: i32) -> (i32, i32, i32, i32) {
    %c0_i32 = arith.constant 0 : i32
    %c0_i32_0 = arith.constant 0 : i32
    %c0_i32_1 = arith.constant 0 : i32
    return %arg0, %arg1, %c0_i32, %c0_i32_0 : i32, i32, i32, i32
  }
  func.func @transform_3(%arg0: i32, %arg1: i32) -> (i32, i32, i32, i32) {
    %c0_i32 = arith.constant 0 : i32
    %c0_i32_0 = arith.constant 0 : i32
    %c0_i32_1 = arith.constant 0 : i32
    return %arg0, %arg1, %c0_i32, %c0_i32_0 : i32, i32, i32, i32
  }
}

module attributes {stable_mosaic.version = 11 : i64} {
  func.func @_matmul_shift_relu_kernel(%arg0: i32, %arg1: i32, %arg2: memref<1x8x128xf32, #tpu.memory_space<vmem>>, %arg3: memref<8x8xf32, #tpu.memory_space<vmem>>, %arg4: memref<8x1xf32, #tpu.memory_space<vmem>>, %arg5: memref<1x8x128xf32, #tpu.memory_space<vmem>>) attributes {dimension_semantics = [#tpu.dimension_semantics<parallel>, #tpu.dimension_semantics<parallel>], iteration_bounds = array<i64: 2, 2>, scalar_prefetch = 0 : i64, scratch_operands = 0 : i64, tpu.core_type = #tpu.core_type<tc>, window_params = [{transform_indices = @transform_0, window_bounds = array<i64: 1, 8, 128>}, {pipeline_mode = #tpu.pipeline_mode<synchronous>, transform_indices = @transform_1, window_bounds = array<i64: 8, 8>}, {pipeline_mode = #tpu.pipeline_mode<synchronous>, transform_indices = @transform_2, window_bounds = array<i64: 8, 1>}, {transform_indices = @transform_3, window_bounds = array<i64: 1, 8, 128>}]} {
    %c0 = arith.constant 0 : index
    %c0_0 = arith.constant 0 : index
    %0 = vector.load %arg3[%c0, %c0_0] : memref<8x8xf32, #tpu.memory_space<vmem>>, vector<8x8xf32>
    %c0_1 = arith.constant 0 : index
    %c0_2 = arith.constant 0 : index
    %c0_3 = arith.constant 0 : index
    %1 = vector.load %arg2[%c0_1, %c0_2, %c0_3] : memref<1x8x128xf32, #tpu.memory_space<vmem>>, vector<1x8x128xf32>
    %2 = vector.shape_cast %1 : vector<1x8x128xf32> to vector<8x128xf32>
    %cst = arith.constant dense<0.000000e+00> : vector<8x128xf32>
    %3 = tpu.matmul %0, %2, %cst {dimension_numbers = #tpu.dot_dimension_numbers<[1], [0], [0], [1], [0, 0, 1, 1], [], []>} : vector<8x8xf32>, vector<8x128xf32>, vector<8x128xf32> -> vector<8x128xf32>
    %c0_4 = arith.constant 0 : index
    %c0_5 = arith.constant 0 : index
    %4 = vector.load %arg4[%c0_4, %c0_5] : memref<8x1xf32, #tpu.memory_space<vmem>>, vector<8x1xf32>
    %5 = vector.broadcast %4 : vector<8x1xf32> to vector<8x128xf32>
    %6 = arith.addf %3, %5 : vector<8x128xf32>
    %cst_6 = arith.constant 0.000000e+00 : f32
    %7 = vector.broadcast %cst_6 : f32 to vector<8x128xf32>
    %8 = arith.maximumf %6, %7 : vector<8x128xf32>
    %c0_7 = arith.constant 0 : index
    %c0_8 = arith.constant 0 : index
    %c0_9 = arith.constant 0 : index
    %9 = vector.load %arg5[%c0_7, %c0_8, %c0_9] : memref<1x8x128xf32, #tpu.memory_space<vmem>>, vector<1x8x128xf32>
    %10 = vector.shape_cast %9 : vector<1x8x128xf32> to vector<8x128xf32>
    %11 = vector.shape_cast %8 : vector<8x128xf32> to vector<1x8x128xf32>
    tpu.vector_store %arg5[%c0_7, %c0_8, %c0_9], %11 {strides = array<i32>} : memref<1x8x128xf32, #tpu.memory_space<vmem>>, vector<1x8x128xf32>,
    return
  }
  func.func @transform_0(%arg0: i32, %arg1: i32) -> (i32, i32, i32) {
    %c0_i32 = arith.constant 0 : i32
    %c0_i32_0 = arith.constant 0 : i32
    return %arg0, %c0_i32, %arg1 : i32, i32, i32
  }
  func.func @transform_1(%arg0: i32, %arg1: i32) -> (i32, i32) {
    %c0_i32 = arith.constant 0 : i32
    %c0_i32_0 = arith.constant 0 : i32
    %c0_i32_1 = arith.constant 0 : i32
    return %c0_i32, %c0_i32_0 : i32, i32
  }
  func.func @transform_2(%arg0: i32, %arg1: i32) -> (i32, i32) {
    %c0_i32 = arith.constant 0 : i32
    %c0_i32_0 = arith.constant 0 : i32
    %c0_i32_1 = arith.constant 0 : i32
    return %c0_i32, %c0_i32_0 : i32, i32
  }
  func.func @transform_3(%arg0: i32, %arg1: i32) -> (i32, i32, i32) {
    %c0_i32 = arith.constant 0 : i32
    %c0_i32_0 = arith.constant 0 : i32
    return %arg0, %c0_i32, %arg1 : i32, i32, i32
  }
}

</mosaic_0001>

<bundles_post_ra>
// kernel: unet_grid_gating_signal.3
= control target key start
LH: loop header
LB: loop body
LE: loop exit
PB: predicated region body
PF: predicated region fallthrough
CT: control target
= control target key end

     0   :  { %s498_s12 = smov 0   ;;  %s500_s13 = smov 0   ;;  %s555_s0 = inlined_call_operand.vmem [shape: f32[2,8,256], index: 0, kind: input, shape index: {}]   ;;  %s556_s1 = inlined_call_operand.vmem [shape: f32[8,8], index: 1, kind: input, shape index: {}]   ;;  %s557_s2 = inlined_call_operand.vmem [shape: f32[8,1], index: 2, kind: input, shape index: {}]   ;;  %s558_s3 = inlined_call_operand.vmem [shape: f32[2,8,256], index: 3, kind: output, shape index: {}]  }
   0x1   :  { %s502_s14 = smov 0   ;;  %s504_s15 = smov 0  }
   0x2   :  { %s506_s16 = smov 0  }
   0x3 LB: > { %s22_s17 = sadd.s32 1, %s465_s14  ;;  %s25_s18 = sadd.s32 1, %s469_s15  ;;  %s473_s16 = sphi %s506_s16, %s13_s16   ;;  %s469_s15 = sphi %s504_s15, %s562_s15   ;;  %s465_s14 = sphi %s502_s14, %s561_s14   ;;  %s461_s13 = sphi %s500_s13, %s560_s13   ;;  %s457_s12 = sphi %s498_s12, %s559_s12  }
   0x4   : > { %p23_p0 = scmp.ge.s32.totalorder %s22_s17, 2  ;;  %p376_p1 = scmp.ge.s32.totalorder %s473_s16, 1 }
   0x5   : > { %p156_p2 = scmp.lt.s32.totalorder %s473_s16, 5 }
   0x6   : > { %s564_s17 = smov (%p23_p0, %s22_s17), 0  ;;  %s566_s18 = smov (!%p23_p0, %s25_s18), %s469_s15 }
   0x7   : > { %p157_p3 = pnand %p376_p1, %p156_p2  ;;  %p27_p4 = scmp.ge.s32.totalorder %s566_s18, 2 }
   0x8   : > { %p186_p5 = scmp.lt.s32.totalorder (!%p157_p3), %s461_s13, 1  ;;  %p188_p6 = scmp.lt.s32.totalorder (!%p157_p3), %s457_s12, 1  ;;  %v475_v0 = vmov (!%p157_p3), 0.0   ;;  %vm476_vm0 = vmmov (!%p157_p3), 0   ;;  %v204_v1 = vld [vmem:[%s557_s2] sm:$0xff] (!%p157_p3)  ;;  %v477_v2 = vmov (!%p157_p3), 0  }
   0x9   : > { %s568_s18 = smov (%p27_p4, %s566_s18), 0  ;;  %160 = sbr.rel (%p157_p3) target bundleno = 240 (0xf0), region = 32 }
   0xa   : > { %386 = vmatprep.subr.mxu0 (!%p157_p3), %v475_v0  ;;  %388 = vmatprep.mubr.msk.f32.mxu0 (!%p157_p3), %vm476_vm0, %v475_v0  ;;  %v202_v3 = vld [vmem:[%s556_s1] sm:$0xff] (!%p157_p3)  ;;  %vm210_vm1 = vcmask (!%p157_p3), 64512  }
   0xb   : > { %434 = vset.pattern.permute.xlu0 (!%p157_p3), %v477_v2 }
   0xc   : > { %207 = vperm.xlu0 (!%p157_p3), %434, %v204_v1  }
  0x10   : > { %s570_s13 = smov (!%p186_p5, %s461_s13), 1  ;;  %s572_s12 = smov (!%p188_p6, %s457_s12), 1 }
  0x11   : > { %s377_s21 = sshll.u32 %s570_s13, 1 }
  0x12   : > { %s191_s22 = sadd.s32 %s377_s21, %s572_s12 }
  0x13   : > { %s378_s23 = sshll.u32 %s191_s22, 3 }
  0x14   : > { %s193_s26 = scalar_lea.vmem %s555_s0, %s378_s23  ;;  %s201_s4 = scalar_lea.vmem %s558_s3, %s378_s23 }
  0x15   : > { %v203_v4 = vld [vmem:[%s193_s26] sm:$0xff] }
  0x16   : > { %387 = vmatpush3.msra.mxu0 %v203_v4 }
  0x17   : > { %389 = vmatmul.mubr.msk.f32.vlgmr.msra.gmra.mrb[0].mxu0 %vm210_vm1, %v202_v3 }
  0x8b   : > { %v208_v5 = vpop.permute.xlu0 %207 }
  0xea   : > { %v280_v6 = vpop.f32.mrb[0].mxu0 }
  0xeb   : > { %v281_v7 = vadd.f32 %v280_v6, %v208_v5  ;;  %v390_v8 = vpop.f32.mrb[1].mxu0 }
  0xed   : > { %v284_v9 = vmax.f32 %v281_v7, 0.0 }
  0xef   : > { %285 = vst [vmem:[%s201_s4] sm:$0xff] %v284_v9 }
  0xf0 PF: > { %s13_s16 = sadd.s32 1, %s473_s16   ;;  %s559_s12 = smov %s465_s14 }
  0xf1   : > { %p10_p7 = scmp.ge.s32.totalorder %s13_s16, 6   ;;  %s560_s13 = smov %s469_s15 }
  0xf2   : > { %s561_s14 = smov %s564_s17  ;;  %s562_s15 = smov %s568_s18 }
  0xf3   :  { %12 = sbr.rel (!%p10_p7) target bundleno = 3 (0x3), region = 62 }

// kernel: unet_grid_gating_signal.2
= control target key start
LH: loop header
LB: loop body
LE: loop exit
PB: predicated region body
PF: predicated region fallthrough
CT: control target
= control target key end

     0   :  { %s565_s12 = smov 0   ;;  %s567_s13 = smov 0   ;;  %s622_s0 = inlined_call_operand.vmem [shape: f32[2,8,256], index: 0, kind: input, shape index: {}]   ;;  %s623_s1 = inlined_call_operand.vmem [shape: f32[8,8], index: 1, kind: input, shape index: {}]   ;;  %s624_s2 = inlined_call_operand.vmem [shape: f32[2,2,8,1], index: 2, kind: output, shape index: {0}]   ;;  %s625_s3 = inlined_call_operand.vmem [shape: f32[2,2,8,1], index: 3, kind: output, shape index: {1}]  }
   0x1   :  { %s569_s14 = smov 0   ;;  %s571_s15 = smov 0  }
   0x2   :  { %s573_s16 = smov 0  }
   0x3 LB: > { %s23_s17 = sadd.s32 1, %s533_s14  ;;  %s26_s18 = sadd.s32 1, %s537_s15  ;;  %s541_s16 = sphi %s573_s16, %s14_s16   ;;  %s537_s15 = sphi %s571_s15, %s629_s15   ;;  %s533_s14 = sphi %s569_s14, %s628_s14   ;;  %s529_s13 = sphi %s567_s13, %s627_s13   ;;  %s525_s12 = sphi %s565_s12, %s626_s12  }
   0x4   : > { %p24_p0 = scmp.ge.s32.totalorder %s23_s17, 2  ;;  %p444_p1 = scmp.ge.s32.totalorder %s541_s16, 1 }
   0x5   : > { %p161_p2 = scmp.lt.s32.totalorder %s541_s16, 5 }
   0x6   : > { %s631_s17 = smov (%p24_p0, %s23_s17), 0  ;;  %s633_s18 = smov (!%p24_p0, %s26_s18), %s537_s15 }
   0x7   : > { %p162_p3 = pnand %p444_p1, %p161_p2  ;;  %p28_p4 = scmp.ge.s32.totalorder %s633_s18, 2 }
   0x8   : > { %p199_p5 = scmp.lt.s32.totalorder (!%p162_p3), %s529_s13, 1  ;;  %p201_p6 = scmp.lt.s32.totalorder (!%p162_p3), %s525_s12, 1  ;;  %v543_v0 = vmov (!%p162_p3), 0.0   ;;  %vm544_vm0 = vmmov (!%p162_p3), 0   ;;  %v223_v1 = vld [vmem:[%s623_s1] sm:$0xff] (!%p162_p3)  ;;  %vm225_vm1 = vcmask (!%p162_p3), 64512  }
   0x9   : > { %s635_s18 = smov (%p28_p4, %s633_s18), 0  ;;  %165 = sbr.rel (%p162_p3) target bundleno = 382 (0x17e), region = 28 }
   0xa   : > { %456 = vmatprep.subr.mxu0 (!%p162_p3), %v543_v0  ;;  %458 = vmatprep.mubr.msk.f32.mxu0 (!%p162_p3), %vm544_vm0, %v543_v0  ;;  %vm301_vm2 = vcmask (!%p162_p3), 7168  }
  0x10   : > { %s637_s13 = smov (!%p199_p5, %s529_s13), 1  ;;  %s639_s12 = smov (!%p201_p6, %s525_s12), 1 }
  0x11   : > { %s445_s19 = sshll.u32 %s637_s13, 1 }
  0x12   : > { %s204_s20 = sadd.s32 %s445_s19, %s639_s12 }
  0x13   : > { %s446_s21 = sshll.u32 %s204_s20, 3 }
  0x14   : > { %s206_s24 = scalar_lea.vmem %s622_s0, %s446_s21  ;;  %s214_s29 = scalar_lea.vmem %s624_s2, %s446_s21 }
  0x15   : > { %v224_v2 = vld [vmem:[%s206_s24] sm:$0xff]  ;;  %s222_s5 = scalar_lea.vmem %s625_s3, %s446_s21 }
  0x16   : > { %457 = vmatpush3.msra.mxu0 %v224_v2 }
  0x17   : > { %459 = vmatmul.mubr.msk.f32.vlgmr.msra.gmra.mrb[0].mxu0 %vm225_vm1, %v223_v1 }
  0xea   : > { %v295_v3 = vpop.f32.mrb[0].mxu0 }
  0xeb   : > { %299 = vadd.xlane.f32.xlu0 %v295_v3  ;;  %v460_v4 = vpop.f32.mrb[1].mxu0  ;;  %v303_v5 = vmul.f32 %v295_v3, %v295_v3 }
  0xef   : > { %304 = vadd.xlane.f32.xlu0 %v303_v5 }
 0x178   : > { %v300_v6 = vpop.xlane.xlu0 %299 }
 0x179   : > { %302 = vst.msk [vmem:[%s214_s29] sm:$0xff] %vm301_vm2, %v300_v6 }
 0x17c   : > { %v305_v7 = vpop.xlane.xlu0 %304 }
 0x17d   : > { %306 = vst.msk [vmem:[%s222_s5] sm:$0xff] %vm301_vm2, %v305_v7 }
 0x17e PF: > { %s14_s16 = sadd.s32 1, %s541_s16   ;;  %s626_s12 = smov %s533_s14 }
 0x17f   : > { %p11_p7 = scmp.ge.s32.totalorder %s14_s16, 6   ;;  %s627_s13 = smov %s537_s15 }
 0x180   : > { %s628_s14 = smov %s631_s17  ;;  %s629_s15 = smov %s635_s18 }
 0x181   :  { %13 = sbr.rel (!%p11_p7) target bundleno = 3 (0x3), region = 70 }

</bundles_post_ra>
